<compile_context>
chip_gen: v7x
topology: tpu7x:2x2x1
jax: 0.10.0
libtpu: 0.0.40
codegen_flags: <defaults>
</compile_context>

<pallas_src>
import math

import jax
import jax.numpy as jnp
from jax import lax
from jax.experimental import pallas as pl
from jax.experimental.pallas import tpu as pltpu


def _node_aggr_dot_kernel(zw_ref, zb_ref, x_ref, out_ref):
    # zw_ref:  (heads*B, K)        resident (constant index_map)
    # zb_ref:  (heads*B, 1)        resident, f32
    # x_ref:   (TILE_N, K)         pipelined over the N grid axis (dominant HBM stream)
    # out_ref: (heads*B, TILE_N)   lane-dense output tile
    acc = lax.dot_general(
        zw_ref[...], x_ref[...],
        dimension_numbers=(((1,), (1,)), ((), ())),     # contract over K (NT matmul)
        preferred_element_type=jnp.float32,
    )                                                   # (heads*B, TILE_N), f32 accumulator
    out_ref[...] = (acc + zb_ref[...]).astype(out_ref.dtype)


def _vmem_limit_bytes():
    """Per-generation scoped-VMEM limit: half of physical VMEM, capped at 64 MiB.

    v7x (64 MiB/TC) -> 32 MiB; v5e/v6e (128 MiB) -> 64 MiB.  Conservative fallback 32 MiB.
    """
    try:
        physical = pltpu.get_tpu_info().vmem_capacity_bytes
    except Exception:
        physical = 64 * 1024 * 1024
    return int(min(physical // 2, 64 * 1024 * 1024))


def _pick_tile_n(N, K, heads, B, x_itemsize, vmem_limit):
    """Largest 128-aligned N tile whose double-buffered working set fits ~60% of the VMEM
    limit, with >= 2 tiles whenever N >= 256 (so both v7x TensorCores get work)."""
    if N < 256:
        return N                                        # single tile; block == full dims
    budget = int(vmem_limit * 0.6)
    per_row = 2 * K * x_itemsize + 2 * heads * B * 4    # dbl-buffered x row + f32 out column
    fixed = 2 * heads * B * (K * x_itemsize + 4)        # resident zw / zb (2 buffers budgeted)
    max_rows = max(128, (budget - fixed) // max(per_row, 1))
    tile = max(128, min(4096, (max_rows // 128) * 128))
    half = 128 * pl.cdiv(pl.cdiv(N, 2), 128)            # ~N/2 rounded up to 128 -> >=2 tiles
    return max(128, min(tile, half))


def node_aggr_dot(z, x, weight, bias, *, heads, output_size, final_act=None, tile_n=None):
    """NodeAggrDOT.forward(z, x) with torch-layout Linear params.

    weight: (heads*output_size, K) with row index d*heads + m; bias: (heads*output_size,).
    """
    if final_act is not None:
        # TODO(synk): relu/sigmoid/softmax final_act (applied inside the MLP *and* after the
        # einsum in the torch module) forbids the z-into-weights pre-contraction; unimplemented.
        raise NotImplementedError("only final_act=None is supported by this kernel")

    B, D = z.shape
    N, K = x.shape
    assert D == output_size
    assert weight.shape == (heads * output_size, K)
    assert bias.shape == (heads * output_size,)
    hb = heads * B

    # --- Pre-contract z into the Linear parameters (tiny: B*D*heads*K flops, plain JAX). ---
    w3 = weight.reshape(D, heads, K)                    # weight[d*heads+m, k] == w3[d, m, k]
    zw = jnp.einsum("bd,dmk->mbk",
                    z.astype(jnp.float32), w3.astype(jnp.float32))
    zw = zw.reshape(hb, K).astype(x.dtype)              # match x dtype (bf16 x -> bf16 zw)
    zb = jnp.einsum("bd,dm->mb",
                    z.astype(jnp.float32), bias.reshape(D, heads).astype(jnp.float32))
    zb = zb.reshape(hb, 1)                              # f32; added after f32 accumulation

    # --- Tiling over N. ---
    vmem_limit = _vmem_limit_bytes()
    if tile_n is None:
        tile_n = _pick_tile_n(N, K, heads, B, x.dtype.itemsize, vmem_limit)
    if tile_n >= N:
        tile_n = N
        n_pad = N
    else:
        assert tile_n % 128 == 0, "tile_n must be a multiple of 128 when tiling N"
        n_pad = tile_n * pl.cdiv(N, tile_n)
    grid = (pl.cdiv(N, tile_n),)                        # x is NOT padded; Pallas handles the tail block

    cost = pl.CostEstimate(
        flops=2 * hb * K * n_pad,
        transcendentals=0,
        bytes_accessed=int(x.size * x.dtype.itemsize + zw.size * zw.dtype.itemsize
                           + zb.size * 4 + hb * n_pad * 4),
    )

    out_hm = pl.pallas_call(
        _node_aggr_dot_kernel,
        out_shape=jax.ShapeDtypeStruct((hb, n_pad), jnp.float32),
        grid=grid,
        in_specs=[
            pl.BlockSpec((hb, K), lambda i: (0, 0)),        # zw (resident)
            pl.BlockSpec((hb, 1), lambda i: (0, 0)),        # zb (resident)
            pl.BlockSpec((tile_n, K), lambda i: (i, 0)),    # x  (pipelined; implicit tail block)
        ],
        out_specs=pl.BlockSpec((hb, tile_n), lambda i: (0, i)),
        compiler_params=pltpu.CompilerParams(
            dimension_semantics=("parallel",),              # shards N across v7x's two TCs
            vmem_limit_bytes=vmem_limit,
        ),
        cost_estimate=cost,
    )(zw, zb, x)

    # Glue: (heads*B, n_pad) -> (B, N, heads).  B*N*heads elements -> negligible vs x traffic.
    out = out_hm.reshape(heads, B, n_pad).transpose(1, 2, 0)
    return out[:, :N, :]


def _reference(z, x, weight, bias, *, heads):
    """Pure-JAX f32 reference mirroring the PyTorch forward (final_act=None)."""
    emb = x.astype(jnp.float32) @ weight.astype(jnp.float32).T + bias.astype(jnp.float32)
    e = emb.reshape(x.shape[0], -1, heads)              # (N, D_out, heads)
    return jnp.einsum("bd,ndm->bnm", z.astype(jnp.float32), e)


if __name__ == "__main__":
    # --- Test 1: small module-consistent shapes (single-tile path). ---
    B, N = 2, 8
    input_size, output_size, heads = 32, 16, 2
    key = jax.random.PRNGKey(0)
    kz, kx, kw, kb = jax.random.split(key, 4)
    z = jax.random.normal(kz, (B, output_size), dtype=jnp.float32)
    x = jax.random.normal(kx, (N, input_size), dtype=jnp.float32)
    bound = 1.0 / math.sqrt(input_size)
    weight = jax.random.uniform(kw, (heads * output_size, input_size),
                                minval=-bound, maxval=bound, dtype=jnp.float32)
    bias = jax.random.uniform(kb, (heads * output_size,),
                              minval=-bound, maxval=bound, dtype=jnp.float32)

    out = node_aggr_dot(z, x, weight, bias, heads=heads, output_size=output_size)
    out = jax.block_until_ready(out)
    ref = _reference(z, x, weight, bias, heads=heads)
    assert out.shape == (B, N, heads), out.shape
    assert jnp.allclose(out, ref, atol=1e-3, rtol=1e-3), "test1 mismatch vs reference"

    # --- Test 2: multi-tile path (auto tile, grid over N, implicit tail block, no pad of x). ---
    B2, N2 = 4, 777                                     # N2 is not a multiple of 128
    input_size2, output_size2, heads2 = 96, 64, 4
    k2 = jax.random.split(jax.random.PRNGKey(0), 4)
    z2 = jax.random.normal(k2[0], (B2, output_size2), dtype=jnp.float32)
    x2 = jax.random.normal(k2[1], (N2, input_size2), dtype=jnp.float32)
    bound2 = 1.0 / math.sqrt(input_size2)
    weight2 = jax.random.uniform(k2[2], (heads2 * output_size2, input_size2),
                                 minval=-bound2, maxval=bound2, dtype=jnp.float32)
    bias2 = jax.random.uniform(k2[3], (heads2 * output_size2,),
                               minval=-bound2, maxval=bound2, dtype=jnp.float32)

    out2 = node_aggr_dot(z2, x2, weight2, bias2, heads=heads2, output_size=output_size2)
    out2 = jax.block_until_ready(out2)
    ref2 = _reference(z2, x2, weight2, bias2, heads=heads2)
    assert out2.shape == (B2, N2, heads2), out2.shape
    rel2 = jnp.max(jnp.abs(out2 - ref2)) / (jnp.max(jnp.abs(ref2)) + 1e-6)
    assert rel2 < 1e-3, f"test2 mismatch vs reference: rel err {rel2}"

    # --- Test 3: bf16 x (halved HBM stream), forced small tile (4 tiles incl. ragged tail). ---
    x2_bf16 = x2.astype(jnp.bfloat16)
    out3 = node_aggr_dot(z2, x2_bf16, weight2, bias2, heads=heads2,
                         output_size=output_size2, tile_n=256)
    out3 = jax.block_until_ready(out3)
    rel3 = jnp.max(jnp.abs(out3 - ref2)) / (jnp.max(jnp.abs(ref2)) + 1e-6)
    assert out3.shape == (B2, N2, heads2), out3.shape
    assert rel3 < 5e-2, f"test3 (bf16) mismatch vs reference: rel err {rel3}"

    print("KERNEL_OK")
</pallas_src>

<mosaic_0001>
module attributes {stable_mosaic.version = 11 : i64} {
  func.func @_node_aggr_dot_kernel(%arg0: i32, %arg1: memref<4x32xf32, #tpu.memory_space<vmem>>, %arg2: memref<4x1xf32, #tpu.memory_space<vmem>>, %arg3: memref<8x32xf32, #tpu.memory_space<vmem>>, %arg4: memref<4x8xf32, #tpu.memory_space<vmem>>) attributes {dimension_semantics = [#tpu.dimension_semantics<parallel>], iteration_bounds = array<i64: 1>, scalar_prefetch = 0 : i64, scratch_operands = 0 : i64, tpu.core_type = #tpu.core_type<tc>, window_params = [{pipeline_mode = #tpu.pipeline_mode<synchronous>, transform_indices = @transform_0, window_bounds = array<i64: 4, 32>}, {pipeline_mode = #tpu.pipeline_mode<synchronous>, transform_indices = @transform_1, window_bounds = array<i64: 4, 1>}, {transform_indices = @transform_2, window_bounds = array<i64: 8, 32>}, {transform_indices = @transform_3, window_bounds = array<i64: 4, 8>}]} {
    %c0 = arith.constant 0 : index
    %c0_0 = arith.constant 0 : index
    %0 = vector.load %arg1[%c0, %c0_0] : memref<4x32xf32, #tpu.memory_space<vmem>>, vector<4x32xf32>
    %c0_1 = arith.constant 0 : index
    %c0_2 = arith.constant 0 : index
    %1 = vector.load %arg3[%c0_1, %c0_2] : memref<8x32xf32, #tpu.memory_space<vmem>>, vector<8x32xf32>
    %cst = arith.constant dense<0.000000e+00> : vector<4x8xf32>
    %2 = tpu.matmul %0, %1, %cst {dimension_numbers = #tpu.dot_dimension_numbers<[1], [1], [0], [0], [0, 0, 1, 0], [], []>} : vector<4x32xf32>, vector<8x32xf32>, vector<4x8xf32> -> vector<4x8xf32>
    %c0_3 = arith.constant 0 : index
    %c0_4 = arith.constant 0 : index
    %3 = vector.load %arg2[%c0_3, %c0_4] : memref<4x1xf32, #tpu.memory_space<vmem>>, vector<4x1xf32>
    %4 = vector.broadcast %3 : vector<4x1xf32> to vector<4x8xf32>
    %5 = arith.addf %2, %4 : vector<4x8xf32>
    %c0_5 = arith.constant 0 : index
    %c0_6 = arith.constant 0 : index
    %6 = vector.load %arg4[%c0_5, %c0_6] : memref<4x8xf32, #tpu.memory_space<vmem>>, vector<4x8xf32>
    tpu.vector_store %arg4[%c0_5, %c0_6], %5 {strides = array<i32>} : memref<4x8xf32, #tpu.memory_space<vmem>>, vector<4x8xf32>,
    return
  }
  func.func @transform_0(%arg0: i32) -> (i32, i32) {
    %c0_i32 = arith.constant 0 : i32
    %c0_i32_0 = arith.constant 0 : i32
    %c0_i32_1 = arith.constant 0 : i32
    return %c0_i32, %c0_i32_0 : i32, i32
  }
  func.func @transform_1(%arg0: i32) -> (i32, i32) {
    %c0_i32 = arith.constant 0 : i32
    %c0_i32_0 = arith.constant 0 : i32
    %c0_i32_1 = arith.constant 0 : i32
    return %c0_i32, %c0_i32_0 : i32, i32
  }
  func.func @transform_2(%arg0: i32) -> (i32, i32) {
    %c0_i32 = arith.constant 0 : i32
    %c0_i32_0 = arith.constant 0 : i32
    return %arg0, %c0_i32 : i32, i32
  }
  func.func @transform_3(%arg0: i32) -> (i32, i32) {
    %c0_i32 = arith.constant 0 : i32
    %c0_i32_0 = arith.constant 0 : i32
    return %c0_i32, %arg0 : i32, i32
  }
}

</mosaic_0001>

<bundles_post_ra>
// kernel: tpu_custom_call.1
= control target key start
LH: loop header
LB: loop body
LE: loop exit
PB: predicated region body
PF: predicated region fallthrough
CT: control target
= control target key end

     0   :  { %vm23_vm0 = vcmask 261120   ;;  %v154_v1 = vmov 0.0   ;;  %vm155_vm1 = vmmov 0   ;;  %s199_s0 = inlined_call_operand.vmem [shape: f32[4,32], index: 0, kind: input, shape index: {}]   ;;  %s200_s1 = inlined_call_operand.vmem [shape: f32[4,1], index: 1, kind: input, shape index: {}]   ;;  %s201_s2 = inlined_call_operand.vmem [shape: f32[8,32], index: 2, kind: input, shape index: {}]   ;;  %s202_s3 = inlined_call_operand.hbm [shape: f32[4,8], index: 3, kind: output, shape index: {}]  }
   0x1   :  { %v16_v0 = vld [vmem:[%s201_s2] sm:$0xff]  ;;  %120 = vmatprep.subr.mxu0 %v154_v1  ;;  %122 = vmatprep.mubr.msk.f32.mxu0 %vm155_vm1, %v154_v1 }
   0x2   :  { %v17_v2 = vld [vmem:[%s200_s1] sm:$0xf] }
   0x3   :  { %8 = vsyncpa [#allocation3], 0  ;;  %121 = vmatpush3.xpose.msk.msra.mxu0 %vm23_vm0, %v16_v0  ;;  %v15_v3 = vld [vmem:[%s199_s0] sm:$0xf]  ;;  %v156_v4 = vmov 0   ;;  %s157_s2 = smov [#allocation2]  }
   0x4   :  { %129 = vset.pattern.permute.xlu0 %v156_v4  ;;  %s108_s18 = sshll.u32 %s157_s2, 4  ;;  %vm100_vm2 = vcmask 60416   ;;  %s109_s18 = int_to_ptr.vmem [resolvable:$true] %s108_s18 }
   0x5   :  { %20 = vperm.xlu0 %129, %v17_v2   ;;  %s130_s1 = scalar_lea.vmem %s109_s18, 64  ;;  %p135_p1 = scmp.lt.s32.totalorder %s109_s18, %s109_s18 }
   0x6   :  { %123 = vmatmul.mubr.msk.f32.vlgmr.msra.gmra.mrb[0].mxu0 %vm23_vm0, %v15_v3  ;;  %p131_p0 = scmp.ne.s32.totalorder %s109_s18, %s130_s1  ;;  %p136_p2 = scmp.lt.s32.totalorder %s130_s1, %s130_s1 }
   0x8   :  { %p137_p3 = por %p136_p2, %p135_p1 }
   0xa   :  { %p138_p4 = pnand %p137_p3, %p131_p0 }
  0x84   :  { %v21_v5 = vpop.permute.xlu0 %20 }
  0xd9   :  { %v96_v6 = vpop.f32.mrb[0].mxu0 }
  0xda   :  { %v97_v7 = vadd.f32 %v96_v6, %v21_v5  ;;  %v124_v8 = vpop.f32.mrb[1].mxu0 }
  0xdc   :  { %101 = vst.msk [vmem:[#allocation2] sm:$0xf] %vm100_vm2, %v97_v7 }
  0xdd   :  { %141 = shalt.err (!%p138_p4)
}
  0xde   :  { %s142_s20 = scalar_lea.hbm %s202_s3, 64 }
  0xdf   :  { %p143_p5 = scmp.ne.s32.totalorder %s202_s3, %s142_s20  ;;  %p146_p6 = scmp.lt.u32.totalorder %s142_s20, %s202_s3 }
  0xe1   :  { %p148_p7 = pnand %p146_p6, %p143_p5 }
  0xe3   :  { %151 = shalt.err (!%p148_p7)
}
  0xe4   :  { %111 = dma.vmem_to_hbm [thread:$0]  %s109_s18, 64, %s202_s3, [#allocation3]  }
  0xe5   :  { %152 = dma.done.wait [#allocation3], 64  }
  0xe6   :  { %153 = vsyncadd [#allocation3], 4294967232 }
  0xe7   :  { %115 = vsyncpa [#allocation3], 1 }

</bundles_post_ra>
